<compile_context>
chip_gen: v7x
topology: tpu7x:2x2x1
jax: 0.10.0
libtpu: 0.0.40
codegen_flags: <defaults>
</compile_context>

<pallas_src>
import numpy as np
import jax
import jax.numpy as jnp
from jax import lax
from jax.experimental import pallas as pl
from jax.experimental.pallas import tpu as pltpu

NEG = -1.0e30        # "-inf" surrogate that keeps exp/log math NaN-free
MAX_BB = 32          # batch rows per grid step (4 f32 vregs of alpha)
LANES = 128
MAX_T_CHUNK = 128    # time steps streamed per grid step (~2 MiB g block at BB=32)


def _round_up(x, m):
    return (x + m - 1) // m * m


def _ctc_alpha_kernel(tmax_smem, ext_ref, g_ref, tlen_ref, llen_ref,
                      loss_ref, alpha_ref):
    """Alpha (forward) recursion for BB examples over one time chunk.

    tmax_smem : SMEM (n_btiles,) i32     scalar-prefetch, per-tile max valid length
    ext_ref   : VMEM (BB, S_pad) i32     blank-interleaved labels (padded lanes = 0)
    g_ref     : VMEM (T_chunk, BB, S_pad) f32  pre-gathered log p(ext[s]) per t
    tlen_ref  : VMEM (BB, 1) i32         per-row valid time steps
    llen_ref  : VMEM (BB, 1) i32         per-row target lengths
    loss_ref  : VMEM (BB, 1) f32         per-row negative log likelihood (out)
    alpha_ref : VMEM (BB, S_pad) f32     scratch, persists across time chunks
    """
    bb, s_pad = ext_ref.shape
    t_chunk = g_ref.shape[0]
    bi = pl.program_id(0)
    ci = pl.program_id(1)
    n_chunks = pl.num_programs(1)
    t0 = ci * t_chunk

    # Loop-invariant tiles, hoisted (JAX does not CSE broadcasts inside loops).
    s_idx = lax.broadcasted_iota(jnp.int32, (bb, s_pad), 1)
    neg_tile = jnp.full((bb, s_pad), NEG, dtype=jnp.float32)
    shift1_mask = s_idx >= 1

    ext = ext_ref[...]
    ext_m2 = pltpu.roll(ext, 2, axis=1)
    # Skip transition allowed at odd s >= 2 when ext[s] != ext[s-2].
    # Lanes >= S hold padding; the end_mask below never selects them, so any
    # junk they carry cannot reach the result.
    skip_mask = (s_idx % 2 == 1) & (s_idx >= 2) & (ext != ext_m2)

    T_col = tlen_ref[...]              # (bb, 1)
    L_col = llen_ref[...]              # (bb, 1)
    tmax = tmax_smem[bi]               # max valid length inside this batch tile

    @pl.when(ci == 0)
    def _init():
        g0 = g_ref[0]
        init_mask = (s_idx == 0) | ((s_idx == 1) & (L_col > 0))
        alpha_ref[...] = jnp.where(init_mask, g0, neg_tile)

    # Local trip range for this chunk; t=0 is consumed by the init above, and
    # chunks entirely beyond the tile's max length run zero iterations.
    start = jnp.where(ci == 0, 1, 0).astype(jnp.int32)
    stop = jnp.clip(tmax - t0, 0, t_chunk).astype(jnp.int32)

    def step(tl, alpha):
        g_t = g_ref[tl]                                      # aligned (bb, s_pad) load
        a1 = jnp.where(shift1_mask, pltpu.roll(alpha, 1, axis=1), neg_tile)
        a2 = jnp.where(skip_mask, pltpu.roll(alpha, 2, axis=1), neg_tile)
        m = jnp.maximum(alpha, jnp.maximum(a1, a2))
        new = m + jnp.log(jnp.exp(alpha - m) + jnp.exp(a1 - m)
                          + jnp.exp(a2 - m)) + g_t
        # Freeze rows whose sequence already ended (per-row length < tile max).
        return jnp.where(t0 + tl < T_col, new, alpha)

    alpha_ref[...] = lax.fori_loop(start, stop, step, alpha_ref[...])

    @pl.when(ci == n_chunks - 1)
    def _finalize():
        alpha = alpha_ref[...]
        # Total likelihood = logaddexp(alpha[2L], alpha[2L-1]).
        end_mask = (s_idx == 2 * L_col) | (s_idx == 2 * L_col - 1)
        masked = jnp.where(end_mask, alpha, neg_tile)
        mm = jnp.max(masked, axis=1, keepdims=True)          # (bb, 1)
        nll = -(mm + jnp.log(jnp.sum(jnp.exp(masked - mm), axis=1, keepdims=True)))
        loss_ref[...] = nll


def ctc_loss(outputs, labels, output_lengths, label_lengths):
    """outputs: (B, T, C) log-probabilities (as nn.CTCLoss expects),
    labels: (B, S_max) int (blank=0 never used as a label),
    output_lengths, label_lengths: (B,) int.
    Returns scalar loss matching nn.CTCLoss() default (blank=0, reduction='mean')."""
    B, T, C = outputs.shape
    S_max = labels.shape[1]
    S = 2 * S_max + 1
    S_pad = _round_up(S, LANES)

    bb = min(MAX_BB, _round_up(max(B, 1), 8))   # keep padding small for tiny batches
    B_pad = _round_up(max(B, 1), bb)
    n_btiles = B_pad // bb
    t_chunk = min(T, MAX_T_CHUNK)
    n_tchunks = pl.cdiv(T, t_chunk)

    logp = outputs.astype(jnp.float32)
    labels_i = labels.astype(jnp.int32)
    # Clamp lengths so the dynamic time loop / end-mask can never index OOB.
    olen = jnp.clip(output_lengths.astype(jnp.int32), 1, T)
    llen = jnp.clip(label_lengths.astype(jnp.int32), 0, S_max)

    # Batch padding: padded rows get T_b=1, L_b=0 and are dropped before the mean.
    pad_b = B_pad - B
    logp_p = jnp.pad(logp, ((0, pad_b), (0, 0), (0, 0)))
    labels_p = jnp.pad(labels_i, ((0, pad_b), (0, 0)))
    olen_p = jnp.pad(olen, (0, pad_b), constant_values=1)
    llen_p = jnp.pad(llen, (0, pad_b), constant_values=0)

    # Blank-interleaved extended labels, already lane-padded (pad index 0 = blank,
    # never selected by the end mask).
    ext = jnp.zeros((B_pad, S_pad), jnp.int32).at[:, 1:S:2].set(labels_p)

    # Gather log p(ext[s]) directly in (T, B_pad, S_pad) layout: no one-hot
    # matmul, no extra pad/transpose pass over g.
    # TODO(synk): optional bf16 storage of g and blank-column dedup would cut the
    # streamed bytes ~4x more (kept f32 here for exact parity with the reference).
    logp_t = jnp.transpose(logp_p, (1, 0, 2))                    # (T, B_pad, C)
    g = jnp.take_along_axis(logp_t, ext[None, :, :], axis=2)     # (T, B_pad, S_pad)

    tlen_col = olen_p.reshape(B_pad, 1)
    llen_col = llen_p.reshape(B_pad, 1)
    tile_tmax = jnp.max(olen_p.reshape(n_btiles, bb), axis=1)    # (n_btiles,)

    nll = pl.pallas_call(
        _ctc_alpha_kernel,
        out_shape=jax.ShapeDtypeStruct((B_pad, 1), jnp.float32),
        grid_spec=pltpu.PrefetchScalarGridSpec(
            num_scalar_prefetch=1,
            grid=(n_btiles, n_tchunks),
            in_specs=[
                pl.BlockSpec((bb, S_pad), lambda i, c, tm: (i, 0)),
                pl.BlockSpec((t_chunk, bb, S_pad), lambda i, c, tm: (c, i, 0)),
                pl.BlockSpec((bb, 1), lambda i, c, tm: (i, 0)),
                pl.BlockSpec((bb, 1), lambda i, c, tm: (i, 0)),
            ],
            out_specs=pl.BlockSpec((bb, 1), lambda i, c, tm: (i, 0)),
            scratch_shapes=[pltpu.VMEM((bb, S_pad), jnp.float32)],
        ),
        compiler_params=pltpu.CompilerParams(
            # batch tiles independent (megacore); time chunks carry alpha scratch
            dimension_semantics=("parallel", "arbitrary"),
        ),
    )(tile_tmax, ext, g, tlen_col, llen_col)

    nll = nll[:B, 0]
    # nn.CTCLoss reduction='mean': divide by target length, then batch mean.
    # TODO(synk): infeasible alignments give a large finite loss rather than +inf
    # (torch with zero_infinity=False would return inf).
    denom = jnp.maximum(label_lengths.astype(jnp.float32), 1.0)
    return jnp.mean(nll / denom)


def _ctc_ref_numpy(log_probs, labels, in_lens, lab_lens, blank=0):
    """Pure-numpy CTC reference (standard alpha recursion) for validation."""
    B = log_probs.shape[0]
    losses = []
    for b in range(B):
        T_b, L = int(in_lens[b]), int(lab_lens[b])
        lab = labels[b, :L]
        ext = [blank]
        for l in lab:
            ext += [int(l), blank]
        S = len(ext)
        alpha = np.full(S, -np.inf)
        alpha[0] = log_probs[b, 0, blank]
        if S > 1:
            alpha[1] = log_probs[b, 0, ext[1]]
        for t in range(1, T_b):
            new = np.full(S, -np.inf)
            for s in range(S):
                acc = alpha[s]
                if s >= 1:
                    acc = np.logaddexp(acc, alpha[s - 1])
                if s >= 2 and ext[s] != blank and ext[s] != ext[s - 2]:
                    acc = np.logaddexp(acc, alpha[s - 2])
                new[s] = acc + log_probs[b, t, ext[s]]
            alpha = new
        ll = np.logaddexp(alpha[S - 1], alpha[S - 2]) if S > 1 else alpha[0]
        losses.append(-ll)
    losses = np.asarray(losses)
    return float(np.mean(losses / np.maximum(lab_lens, 1)))


if __name__ == "__main__":
    key = jax.random.PRNGKey(0)
    B, T, C, S_max = 2, 8, 16, 4

    k1, k2 = jax.random.split(key)
    logits = jax.random.normal(k1, (B, T, C), jnp.float32)
    # nn.CTCLoss expects log-softmaxed inputs; apply here (input construction).
    log_probs = jax.nn.log_softmax(logits, axis=-1)
    labels = jax.random.randint(k2, (B, S_max), 1, C, dtype=jnp.int32)
    output_lengths = jnp.array([8, 7], jnp.int32)
    label_lengths = jnp.array([3, 4], jnp.int32)

    loss = ctc_loss(log_probs, labels, output_lengths, label_lengths)
    loss = jax.block_until_ready(loss)

    ref = _ctc_ref_numpy(np.asarray(log_probs), np.asarray(labels),
                         np.asarray(output_lengths), np.asarray(label_lengths))
    np.testing.assert_allclose(float(loss), ref, rtol=1e-3, atol=1e-3)
    print("KERNEL_OK")
</pallas_src>

<mosaic_0001>
module attributes {stable_mosaic.version = 11 : i64} {
  func.func @_ctc_alpha_kernel(%arg0: i32, %arg1: i32, %arg2: memref<1xi32, #tpu.memory_space<smem>>, %arg3: memref<8x128xi32, #tpu.memory_space<vmem>>, %arg4: memref<8x8x128xf32, #tpu.memory_space<vmem>>, %arg5: memref<8x1xi32, #tpu.memory_space<vmem>>, %arg6: memref<8x1xi32, #tpu.memory_space<vmem>>, %arg7: memref<8x1xf32, #tpu.memory_space<vmem>>, %arg8: memref<8x128xf32, #tpu.memory_space<vmem>>) attributes {dimension_semantics = [#tpu.dimension_semantics<parallel>, #tpu.dimension_semantics<arbitrary>], iteration_bounds = array<i64: 1, 1>, scalar_prefetch = 1 : i64, scratch_operands = 1 : i64, tpu.core_type = #tpu.core_type<tc>, window_params = [{transform_indices = @transform_0, window_bounds = array<i64: 8, 128>}, {transform_indices = @transform_1, window_bounds = array<i64: 8, 8, 128>}, {transform_indices = @transform_2, window_bounds = array<i64: 8, 1>}, {transform_indices = @transform_3, window_bounds = array<i64: 8, 1>}, {transform_indices = @transform_4, window_bounds = array<i64: 8, 1>}]} {
    %c8_i32 = arith.constant 8 : i32
    %0 = arith.muli %arg1, %c8_i32 : i32
    %1 = tpu.iota {dimensions = array<i32: 1>} : vector<8x128xi32>
    %cst = arith.constant -1.000000e+30 : f32
    %2 = vector.broadcast %cst : f32 to vector<8x128xf32>
    %c1_i32 = arith.constant 1 : i32
    %3 = vector.broadcast %c1_i32 : i32 to vector<8x128xi32>
    %4 = arith.cmpi sge, %1, %3 : vector<8x128xi32>
    %c0 = arith.constant 0 : index
    %c0_0 = arith.constant 0 : index
    %5 = vector.load %arg3[%c0, %c0_0] : memref<8x128xi32, #tpu.memory_space<vmem>>, vector<8x128xi32>
    %c2_i32 = arith.constant 2 : i32
    %6 = tpu.dynamic_rotate %5 by %c2_i32 dim 1 : vector<8x128xi32>, i32 -> vector<8x128xi32>
    %c2_i32_1 = arith.constant 2 : i32
    %c0_i32 = arith.constant 0 : i32
    %7 = arith.cmpi eq, %c2_i32_1, %c0_i32 : i32
    %c1_i32_2 = arith.constant 1 : i32
    %8 = arith.select %7, %c1_i32_2, %c2_i32_1 : i32
    %9 = vector.broadcast %8 : i32 to vector<8x128xi32>
    %10 = arith.remsi %1, %9 : vector<8x128xi32>
    %c0_i32_3 = arith.constant 0 : i32
    %11 = vector.broadcast %c0_i32_3 : i32 to vector<8x128xi32>
    %12 = arith.cmpi ne, %10, %11 : vector<8x128xi32>
    %c0_i32_4 = arith.constant 0 : i32
    %13 = vector.broadcast %c0_i32_4 : i32 to vector<8x128xi32>
    %14 = arith.cmpi slt, %10, %13 : vector<8x128xi32>
    %c0_i32_5 = arith.constant 0 : i32
    %15 = arith.cmpi slt, %8, %c0_i32_5 : i32
    %16 = vector.broadcast %15 : i1 to vector<8x128xi1>
    %17 = vector.broadcast %16 : vector<8x128xi1> to vector<8x128xi1>
    %18 = arith.xori %14, %17 : vector<8x128xi1>
    %19 = arith.andi %18, %12 : vector<8x128xi1>
    %20 = vector.broadcast %8 : i32 to vector<8x128xi32>
    %21 = arith.addi %10, %20 : vector<8x128xi32>
    %22 = arith.select %19, %21, %10 : vector<8x128xi1>, vector<8x128xi32>
    %c1_i32_6 = arith.constant 1 : i32
    %23 = vector.broadcast %c1_i32_6 : i32 to vector<8x128xi32>
    %24 = arith.cmpi eq, %22, %23 : vector<8x128xi32>
    %c2_i32_7 = arith.constant 2 : i32
    %25 = vector.broadcast %c2_i32_7 : i32 to vector<8x128xi32>
    %26 = arith.cmpi sge, %1, %25 : vector<8x128xi32>
    %27 = arith.andi %24, %26 : vector<8x128xi1>
    %28 = arith.cmpi ne, %5, %6 : vector<8x128xi32>
    %29 = arith.andi %27, %28 : vector<8x128xi1>
    %c0_8 = arith.constant 0 : index
    %c0_9 = arith.constant 0 : index
    %30 = vector.load %arg5[%c0_8, %c0_9] : memref<8x1xi32, #tpu.memory_space<vmem>>, vector<8x1xi32>
    %c0_10 = arith.constant 0 : index
    %c0_11 = arith.constant 0 : index
    %31 = vector.load %arg6[%c0_10, %c0_11] : memref<8x1xi32, #tpu.memory_space<vmem>>, vector<8x1xi32>
    %32 = arith.index_cast %arg0 : i32 to index
    %33 = memref.load %arg2[%32] : memref<1xi32, #tpu.memory_space<smem>>
    %c0_i32_12 = arith.constant 0 : i32
    %34 = arith.cmpi eq, %arg1, %c0_i32_12 : i32
    %35 = arith.extui %34 : i1 to i32
    %c0_i32_13 = arith.constant 0 : i32
    %36 = arith.cmpi ne, %35, %c0_i32_13 : i32
    scf.if %36 {
      %c0_26 = arith.constant 0 : index
      %c0_27 = arith.constant 0 : index
      %c0_28 = arith.constant 0 : index
      %50 = vector.load %arg4[%c0_26, %c0_27, %c0_28] : memref<8x8x128xf32, #tpu.memory_space<vmem>>, vector<1x8x128xf32>
      %51 = vector.shape_cast %50 : vector<1x8x128xf32> to vector<8x128xf32>
      %c0_i32_29 = arith.constant 0 : i32
      %52 = vector.broadcast %c0_i32_29 : i32 to vector<8x128xi32>
      %53 = arith.cmpi eq, %1, %52 : vector<8x128xi32>
      %c1_i32_30 = arith.constant 1 : i32
      %54 = vector.broadcast %c1_i32_30 : i32 to vector<8x128xi32>
      %55 = arith.cmpi eq, %1, %54 : vector<8x128xi32>
      %c0_i32_31 = arith.constant 0 : i32
      %56 = vector.broadcast %c0_i32_31 : i32 to vector<8x1xi32>
      %57 = arith.cmpi sgt, %31, %56 : vector<8x1xi32>
      %58 = vector.broadcast %57 : vector<8x1xi1> to vector<8x128xi1>
      %59 = arith.andi %55, %58 : vector<8x128xi1>
      %60 = arith.ori %53, %59 : vector<8x128xi1>
      %61 = arith.select %60, %51, %2 : vector<8x128xi1>, vector<8x128xf32>
      %c0_32 = arith.constant 0 : index
      %c0_33 = arith.constant 0 : index
      %62 = vector.load %arg8[%c0_32, %c0_33] : memref<8x128xf32, #tpu.memory_space<vmem>>, vector<8x128xf32>
      tpu.vector_store %arg8[%c0_32, %c0_33], %61 {strides = array<i32>} : memref<8x128xf32, #tpu.memory_space<vmem>>, vector<8x128xf32>,
    } else {
    }
    %c0_i32_14 = arith.constant 0 : i32
    %37 = arith.cmpi eq, %arg1, %c0_i32_14 : i32
    %c1_i32_15 = arith.constant 1 : i32
    %c0_i32_16 = arith.constant 0 : i32
    %38 = arith.select %37, %c1_i32_15, %c0_i32_16 : i32
    %39 = arith.subi %33, %0 : i32
    %c0_i32_17 = arith.constant 0 : i32
    %c8_i32_18 = arith.constant 8 : i32
    %40 = arith.maxsi %c0_i32_17, %39 : i32
    %41 = arith.minsi %c8_i32_18, %40 : i32
    %c0_19 = arith.constant 0 : index
    %c0_20 = arith.constant 0 : index
    %42 = vector.load %arg8[%c0_19, %c0_20] : memref<8x128xf32, #tpu.memory_space<vmem>>, vector<8x128xf32>
    %43 = arith.subi %41, %38 : i32
    %44 = arith.addi %38, %43 : i32
    %c1_i32_21 = arith.constant 1 : i32
    %45 = scf.for %arg9 = %38 to %44 step %c1_i32_21 iter_args(%arg10 = %42) -> (vector<8x128xf32>)  : i32 {
      %50 = arith.index_cast %arg9 : i32 to index
      %c0_26 = arith.constant 0 : index
      %c0_27 = arith.constant 0 : index
      %51 = vector.load %arg4[%50, %c0_26, %c0_27] : memref<8x8x128xf32, #tpu.memory_space<vmem>>, vector<1x8x128xf32>
      %52 = vector.shape_cast %51 : vector<1x8x128xf32> to vector<8x128xf32>
      %c1_i32_28 = arith.constant 1 : i32
      %53 = tpu.dynamic_rotate %arg10 by %c1_i32_28 dim 1 : vector<8x128xf32>, i32 -> vector<8x128xf32>
      %54 = arith.select %4, %53, %2 : vector<8x128xi1>, vector<8x128xf32>
      %c2_i32_29 = arith.constant 2 : i32
      %55 = tpu.dynamic_rotate %arg10 by %c2_i32_29 dim 1 : vector<8x128xf32>, i32 -> vector<8x128xf32>
      %56 = arith.select %29, %55, %2 : vector<8x128xi1>, vector<8x128xf32>
      %57 = arith.maximumf %54, %56 : vector<8x128xf32>
      %58 = arith.maximumf %arg10, %57 : vector<8x128xf32>
      %59 = arith.subf %arg10, %58 : vector<8x128xf32>
      %60 = math.exp %59 : vector<8x128xf32>
      %61 = arith.subf %54, %58 : vector<8x128xf32>
      %62 = math.exp %61 : vector<8x128xf32>
      %63 = arith.addf %60, %62 : vector<8x128xf32>
      %64 = arith.subf %56, %58 : vector<8x128xf32>
      %65 = math.exp %64 : vector<8x128xf32>
      %66 = arith.addf %63, %65 : vector<8x128xf32>
      %67 = math.log %66 : vector<8x128xf32>
      %68 = arith.addf %58, %67 : vector<8x128xf32>
      %69 = arith.addf %68, %52 : vector<8x128xf32>
      %70 = arith.addi %0, %arg9 : i32
      %71 = vector.broadcast %70 : i32 to vector<8x1xi32>
      %72 = arith.cmpi slt, %71, %30 : vector<8x1xi32>
      %73 = vector.shape_cast %72 : vector<8x1xi1> to vector<8x1xi1>
      %74 = vector.broadcast %73 : vector<8x1xi1> to vector<8x128xi1>
      %75 = arith.select %74, %69, %arg10 : vector<8x128xi1>, vector<8x128xf32>
      scf.yield %75 : vector<8x128xf32>
    }
    %c0_22 = arith.constant 0 : index
    %c0_23 = arith.constant 0 : index
    %46 = vector.load %arg8[%c0_22, %c0_23] : memref<8x128xf32, #tpu.memory_space<vmem>>, vector<8x128xf32>
    tpu.vector_store %arg8[%c0_22, %c0_23], %45 {strides = array<i32>} : memref<8x128xf32, #tpu.memory_space<vmem>>, vector<8x128xf32>,
    %c0_i32_24 = arith.constant 0 : i32
    %47 = arith.cmpi eq, %arg1, %c0_i32_24 : i32
    %48 = arith.extui %47 : i1 to i32
    %c0_i32_25 = arith.constant 0 : i32
    %49 = arith.cmpi ne, %48, %c0_i32_25 : i32
    scf.if %49 {
      %c0_26 = arith.constant 0 : index
      %c0_27 = arith.constant 0 : index
      %50 = vector.load %arg8[%c0_26, %c0_27] : memref<8x128xf32, #tpu.memory_space<vmem>>, vector<8x128xf32>
      %c2_i32_28 = arith.constant 2 : i32
      %51 = vector.broadcast %c2_i32_28 : i32 to vector<8x1xi32>
      %52 = arith.muli %51, %31 : vector<8x1xi32>
      %53 = vector.broadcast %52 : vector<8x1xi32> to vector<8x128xi32>
      %54 = arith.cmpi eq, %1, %53 : vector<8x128xi32>
      %c2_i32_29 = arith.constant 2 : i32
      %55 = vector.broadcast %c2_i32_29 : i32 to vector<8x1xi32>
      %56 = arith.muli %55, %31 : vector<8x1xi32>
      %c1_i32_30 = arith.constant 1 : i32
      %57 = vector.broadcast %c1_i32_30 : i32 to vector<8x1xi32>
      %58 = arith.subi %56, %57 : vector<8x1xi32>
      %59 = vector.broadcast %58 : vector<8x1xi32> to vector<8x128xi32>
      %60 = arith.cmpi eq, %1, %59 : vector<8x128xi32>
      %61 = arith.ori %54, %60 : vector<8x128xi1>
      %62 = arith.select %61, %50, %2 : vector<8x128xi1>, vector<8x128xf32>
      %cst_31 = arith.constant dense<0xFF800000> : vector<8xf32>
      %63 = vector.multi_reduction <maximumf>, %62, %cst_31 [1] : vector<8x128xf32> to vector<8xf32>
      %64 = vector.shape_cast %63 : vector<8xf32> to vector<8x1xf32>
      %65 = vector.broadcast %64 : vector<8x1xf32> to vector<8x128xf32>
      %66 = arith.subf %62, %65 : vector<8x128xf32>
      %67 = math.exp %66 : vector<8x128xf32>
      %cst_32 = arith.constant dense<0.000000e+00> : vector<8xf32>
      %68 = vector.multi_reduction <add>, %67, %cst_32 [1] : vector<8x128xf32> to vector<8xf32>
      %69 = vector.shape_cast %68 : vector<8xf32> to vector<8x1xf32>
      %70 = math.log %69 : vector<8x1xf32>
      %71 = arith.addf %64, %70 : vector<8x1xf32>
      %cst_33 = arith.constant 0.000000e+00 : f32
      %72 = vector.broadcast %cst_33 : f32 to vector<8x1xf32>
      %73 = arith.subf %72, %71 : vector<8x1xf32>
      %c0_34 = arith.constant 0 : index
      %c0_35 = arith.constant 0 : index
      %74 = vector.load %arg7[%c0_34, %c0_35] : memref<8x1xf32, #tpu.memory_space<vmem>>, vector<8x1xf32>
      tpu.vector_store %arg7[%c0_34, %c0_35], %73 {strides = array<i32>} : memref<8x1xf32, #tpu.memory_space<vmem>>, vector<8x1xf32>,
    } else {
    }
    return
  }
  func.func @transform_0(%arg0: i32, %arg1: i32, %arg2: memref<1xi32, #tpu.memory_space<smem>>) -> (i32, i32) {
    %c0_i32 = arith.constant 0 : i32
    %c0_i32_0 = arith.constant 0 : i32
    return %arg0, %c0_i32 : i32, i32
  }
  func.func @transform_1(%arg0: i32, %arg1: i32, %arg2: memref<1xi32, #tpu.memory_space<smem>>) -> (i32, i32, i32) {
    %c0_i32 = arith.constant 0 : i32
    %c0_i32_0 = arith.constant 0 : i32
    return %arg1, %arg0, %c0_i32 : i32, i32, i32
  }
  func.func @transform_2(%arg0: i32, %arg1: i32, %arg2: memref<1xi32, #tpu.memory_space<smem>>) -> (i32, i32) {
    %c0_i32 = arith.constant 0 : i32
    %c0_i32_0 = arith.constant 0 : i32
    return %arg0, %c0_i32 : i32, i32
  }
  func.func @transform_3(%arg0: i32, %arg1: i32, %arg2: memref<1xi32, #tpu.memory_space<smem>>) -> (i32, i32) {
    %c0_i32 = arith.constant 0 : i32
    %c0_i32_0 = arith.constant 0 : i32
    return %arg0, %c0_i32 : i32, i32
  }
  func.func @transform_4(%arg0: i32, %arg1: i32, %arg2: memref<1xi32, #tpu.memory_space<smem>>) -> (i32, i32) {
    %c0_i32 = arith.constant 0 : i32
    %c0_i32_0 = arith.constant 0 : i32
    return %arg0, %c0_i32 : i32, i32
  }
}

</mosaic_0001>

<bundles_post_ra>
// kernel: tpu_custom_call.1
= control target key start
LH: loop header
LB: loop body
LE: loop exit
PB: predicated region body
PF: predicated region fallthrough
CT: control target
= control target key end

     0   :  { %11 = vsyncpa [#allocation6], 0  ;;  %s277_s18 = smov [#allocation5]   ;;  %s389_s0 = inlined_call_operand.<no memory space> [shape: s32[1], index: 0, kind: input, shape index: {}]   ;;  %s390_s1 = inlined_call_operand.vmem [shape: s32[8,128], index: 1, kind: input, shape index: {}]   ;;  %s391_s2 = inlined_call_operand.hbm [shape: f32[8,8,128], index: 2, kind: input, shape index: {}]   ;;  %s392_s3 = inlined_call_operand.vmem [shape: s32[8,1], index: 3, kind: input, shape index: {}]   ;;  %s393_s4 = inlined_call_operand.vmem [shape: s32[8,1], index: 4, kind: input, shape index: {}]   ;;  %s394_s5 = inlined_call_operand.vmem [shape: f32[8,1], index: 5, kind: output, shape index: {}]  }
   0x1   :  { %s19_s19 = sshll.u32 %s277_s18, 4  ;;  %s229_s22 = scalar_lea.hbm %s391_s2, 1024  ;;  %s20_s19 = int_to_ptr.vmem [resolvable:$true] %s19_s19 }
   0x2   :  { %p230_p0 = scmp.ne.s32.totalorder %s391_s2, %s229_s22  ;;  %p233_p1 = scmp.lt.u32.totalorder %s229_s22, %s391_s2 }
   0x4   :  { %p235_p2 = pnand %p233_p1, %p230_p0 }
   0x6   :  { %238 = shalt.err (!%p235_p2)
}
   0x7   :  { %s239_s27 = scalar_lea.vmem %s20_s19, 1024  ;;  %p244_p4 = scmp.lt.s32.totalorder %s20_s19, %s20_s19 }
   0x8   :  { %p240_p3 = scmp.ne.s32.totalorder %s20_s19, %s239_s27  ;;  %p245_p5 = scmp.lt.s32.totalorder %s239_s27, %s239_s27 }
   0xa   :  { %p246_p6 = por %p245_p5, %p244_p4 }
   0xc   :  { %p247_p7 = pnand %p246_p6, %p240_p3 }
   0xe   :  { %250 = shalt.err (!%p247_p7)
}
   0xf   :  { %s278_s28 = smov 128   ;;  %s279_s29 = smov 8  }
  0x10   :  { %25 = dma.hbm_to_vmem [thread:$0]  %s391_s2, 1024, %s20_s19, [#allocation6], %s278_s28, %s278_s28, %s279_s29  }
  0x11   :  { %263 = dma.done.wait [#allocation6], 1024  }
  0x12   :  { %264 = vsyncadd [#allocation6], 4294966272  ;;  %v34_v0 = vlaneseq  ;;  %v280_v1 = vmov 0   ;;  %v334_v3 = vld [vmem:[%s392_s3] sm:$0xff]  ;;  %p79_p8 = scmp.gt.s32.totalorder %s389_s0, 0  ;;  %s281_s16 = smov 2  }
  0x13   :  { %213 = vset.pattern.permute.xlu0 %v280_v1  ;;  %v339_v4 = vld [vmem:[%s393_s4] sm:$0xff]  ;;  %p171_p9 = scmp.lt.s32.totalorder %s389_s0, 8 }
  0x14   :  { %v328_v2 = vand.u32 127, %v34_v0  ;;  %vm67_vm1 = vcmp.gt.s32.totalorder %v339_v4, 0  ;;  %v37_v6 = vld [vmem:[%s390_s1] sm:$0xff]  ;;  %s80_s15 = scalar_select %p79_p8, %s389_s0, 0 }
  0x15   :  { %v68_v5 = vsel %vm67_vm1, 1, %v280_v1  ;;  %v64_v9 = vld [vmem:[#allocation5] sm:$0xff] }
  0x16   :  { %vm36_vm0 = vcmp.ge.s32.totalorder %v328_v2, 1  ;;  %70 = vperm.xlu0 %213, %v68_v5   ;;  %s398_s15 = smov (!%p171_p9, %s80_s15), 8  ;;  %v44_v7 = vand.u32 1, %v328_v2  ;;  %vm53_vm3 = vcmp.ge.s32.totalorder %v328_v2, 2  ;;  %vm66_vm4 = vcmp.eq.s32.totalorder %v328_v2, 1 }
  0x17   :  { %vm65_vm5 = vcmp.eq.s32.totalorder %v328_v2, 0  ;;  %p176_p10 = scmp.le.s32.totalorder %s398_s15, 1 }
  0x18   :  { %vm52_vm2 = vcmp.eq.s32.totalorder %v44_v7, 1  ;;  %s366_s0 = smov (!%p176_p10), 1  }
  0x19   :  { %vm54_vm7 = vmand %vm52_vm2, %vm53_vm3 }
  0x1a   :  { %38 = vrot.lane.b32.xlu0 %v37_v6, %s281_s16 }
  0x95   :  { %v71_v8 = vpop.permute.xlu0 %70  ;;  %166 = sbr.rel (%p176_p10) target bundleno = 321 (0x141), region = 50 }
  0x96   :  { %vm72_vm6 = vcmp.eq.s32.totalorder %v71_v8, 1 }
  0x97   :  { %vm73_vm8 = vmand %vm66_vm4, %vm72_vm6 }
  0x98   :  { %vm74_vm9 = vmor %vm65_vm5, %vm73_vm8 }
  0x99   :  { %v75_v10 = vsel %vm74_vm9, %v64_v9, -1e+30   ;;  %v39_v11 = vpop.permute.xlu0 %38 }
  0x9a   :  { %vm55_vm10 = vcmp.ne.s32.totalorder %v37_v6, %v39_v11  ;;  %v273_v13 = vmov %v75_v10   ;;  %v265_v14 = vmov (!%p176_p10), %v75_v10  }
  0x9b   :  { %vm361_vm11 = vmand %vm54_vm7, %vm55_vm10 }
  0x9c LB: > { %v282_v15 = vmov 0   ;;  %s283_s1 = smov 1   ;;  %v118_v16 = vstv %s271_s0  ;;  %s284_s18 = smov 2   ;;  %s271_s0 = sphi %s366_s0, %s87_s0   ;;  %v267_v14 = vphi %v265_v14, %v266_v14  }
  0x9d   : > { %214 = vset.pattern.permute.xlu1 %v282_v15  ;;  %215 = vset.pattern.permute.xlu0 %v282_v15  ;;  %vm119_vm12 = vcmp.lt.s32.totalorder %v118_v16, %v334_v3  ;;  %s177_s19 = sshll.u32 %s271_s0, 3  ;;  %s87_s0 = sadd.s32 1, %s271_s0  }
  0x9e   : > { %94 = vrot.lane.b32.xlu0 %v267_v14, %s283_s1  ;;  %v120_v17 = vsel %vm119_vm12, 1, %v282_v15  ;;  %s92_s20 = scalar_lea.vmem [#allocation5], %s177_s19  ;;  %p86_p11 = scmp.ge.s32.totalorder %s87_s0, %s398_s15 }
  0x9f   : > { %122 = vperm.xlu1 %214, %v120_v17   ;;  %v93_v38 = vld [vmem:[%s92_s20] sm:$0xff] }
  0xa2   : > { %97 = vrot.lane.b32.xlu0 %v267_v14, %s284_s18 }
 0x110   : > { %v95_v18 = vpop.permute.xlu0 %94 }
 0x111   : > { %v96_v20 = vsel %vm36_vm0, %v95_v18, -1e+30 }
 0x114   : > { %v98_v19 = vpop.permute.xlu0 %97 }
 0x115   : > { %v99_v21 = vsel %vm361_vm11, %v98_v19, -1e+30 }
 0x116   : > { %v100_v22 = vmax.f32 %v96_v20, %v99_v21 }
 0x118   : > { %v101_v23 = vmax.f32 %v267_v14, %v100_v22 }
 0x11a   : > { %v102_v24 = vsub.f32 %v267_v14, %v101_v23  ;;  %v105_v25 = vsub.f32 %v96_v20, %v101_v23  ;;  %v109_v26 = vsub.f32 %v99_v21, %v101_v23 }
 0x11c   : > { %v103_v27 = vmul.f32 1.442695, %v102_v24  ;;  %v106_v28 = vmul.f32 1.442695, %v105_v25  ;;  %v110_v29 = vmul.f32 1.442695, %v109_v26 }
 0x11e   : > { %216 = vpow2.f32 %v103_v27  ;;  %v123_v36 = vpop.permute.xlu1 %122 }
 0x11f   : > { %218 = vpow2.f32 %v106_v28  ;;  %vm124_vm13 = vcmp.eq.s32.totalorder %v123_v36, 1 }
 0x120   : > { %220 = vpow2.f32 %v110_v29 }
 0x128   : > { %v217_v30 = vpop.eup %216 }
 0x129   : > { %v219_v31 = vpop.eup %218 }
 0x12a   : > { %v108_v32 = vadd.f32 %v219_v31, %v217_v30  ;;  %v221_v33 = vpop.eup %220 }
 0x12c   : > { %v112_v34 = vadd.f32 %v221_v33, %v108_v32 }
 0x12e   : > { %222 = vlog2.f32 %v112_v34 }
 0x138   : > { %v223_v35 = vpop.eup %222 }
 0x139   : > { %v114_v37 = vmul.f32 0.6931472, %v223_v35 }
 0x13a   :  { %89 = sbr.rel (!%p86_p11) target bundleno = 156 (0x9c), region = 56 }
 0x13b   : > { %v115_v39 = vadd.f32 %v114_v37, %v101_v23 }
 0x13d   : > { %v116_v40 = vadd.f32 %v115_v39, %v93_v38 }
 0x13f   : > { %v125_v41 = vsel %vm124_vm13, %v116_v40, %v267_v14  }
 0x140   : > { %v266_v14 = vmov %v125_v41   ;;  %v274_v13 = vmov (%p86_p11), %v125_v41  }
 0x141 PF:  { %224 = vset.pattern.permute.xlu0 %v280_v1  ;;  %v131_v42 = vmul.u32 2, %v339_v4  ;;  %vm154_vm0 = vcmask 7168   ;;  %v275_v13 = vphi %v273_v13, %v274_v13  }
 0x143   :  { %133 = vperm.xlu0 %224, %v131_v42   ;;  %v178_v43 = vadd.s32 4294967295, %v131_v42 }
 0x147   :  { %138 = vperm.xlu0 %224, %v178_v43  }
 0x1c2   :  { %v134_v44 = vpop.permute.xlu0 %133 }
 0x1c3   :  { %vm135_vm14 = vcmp.eq.s32.totalorder %v328_v2, %v134_v44 }
 0x1c6   :  { %v139_v45 = vpop.permute.xlu0 %138 }
 0x1c7   :  { %vm140_vm15 = vcmp.eq.s32.totalorder %v328_v2, %v139_v45 }
 0x1c8   :  { %vm141_vm1 = vmor %vm135_vm14, %vm140_vm15 }
 0x1c9   :  { %v142_v46 = vsel %vm141_vm1, %v275_v13, -1e+30 }
 0x1ca   :  { %143 = vmax.xlane.f32.xlu1 %v142_v46 }
 0x257   :  { %v144_v47 = vpop.xlane.xlu1 %143 }
 0x258   :  { %v145_v48 = vsub.f32 %v142_v46, %v144_v47 }
 0x25a   :  { %v146_v49 = vmul.f32 1.442695, %v145_v48 }
 0x25c   :  { %225 = vpow2.f32 %v146_v49 }
 0x266   :  { %v226_v50 = vpop.eup %225 }
 0x267   :  { %148 = vadd.xlane.f32.xlu1 %v226_v50 }
 0x2f4   :  { %v149_v51 = vpop.xlane.xlu1 %148 }
 0x2f5   :  { %227 = vlog2.f32 %v149_v51 }
 0x2ff   :  { %v228_v52 = vpop.eup %227 }
 0x300   :  { %v151_v53 = vmul.f32 0.6931472, %v228_v52 }
 0x302   :  { %v152_v54 = vadd.f32 %v151_v53, %v144_v47 }
 0x304   :  { %v153_v55 = vsub.f32 0.0, %v152_v54 }
 0x306   :  { %155 = vst.msk [vmem:[%s394_s5] sm:$0xff] %vm154_vm0, %v153_v55 }
 0x307   :  { %160 = vsyncpa [#allocation6], 1 }

</bundles_post_ra>
